<compile_context>
chip_gen: v7x
topology: tpu7x:2x2x1
jax: 0.10.0
libtpu: 0.0.40
codegen_flags: <defaults>
</compile_context>

<pallas_src>
import jax
import jax.numpy as jnp
from jax import lax
from jax.experimental import pallas as pl
from jax.experimental.pallas import tpu as pltpu


# ----------------------------------------------------------------------------
# Hardware-aware sizing helpers
# ----------------------------------------------------------------------------

def _vmem_capacity_bytes():
    """Physical VMEM per TensorCore; conservative 64 MiB (v7x) if unknown."""
    try:
        info = pltpu.get_tpu_info()
        for name in ("vmem_capacity_bytes", "vmem_size_bytes", "vmem_bytes"):
            val = getattr(info, name, None)
            if val:
                return int(val)
    except Exception:
        pass
    return 64 * 1024 * 1024


def _num_tensorcores(vmem_bytes):
    """v7x is the only generation with 2 TensorCores/chip (and 64 MiB VMEM/TC)."""
    try:
        kind = jax.devices()[0].device_kind.lower()
    except Exception:
        kind = ""
    if "v7" in kind:
        return 2
    return 2 if vmem_bytes <= 80 * 1024 * 1024 else 1


def _pick_tb(B, per_batch_bytes, tile_budget_bytes, num_tc):
    """Batch rows per grid step for the fused path.

    Fits 2 pipeline buffers x (input + output) in the tile budget.  On 2-TC
    chips, prefers a tile whose grid length is a multiple of the core count.
    Returns 0 if even a single batch row does not fit (-> chunked path)."""
    if 4 * per_batch_bytes > tile_budget_bytes:
        return 0
    max_tb = max(1, tile_budget_bytes // (4 * per_batch_bytes))
    divisors = [d for d in range(1, B + 1) if B % d == 0 and d <= max_tb]
    if num_tc > 1:
        balanced = [d for d in divisors if (B // d) % num_tc == 0]
        if balanced:
            return max(balanced)
    return max(divisors)


def _pick_tc(C, HW, itemsize, tile_budget_bytes, max_channel_chunk=None):
    """Channel chunk for the fallback path: a multiple of 128 dividing C (or C
    itself) such that 2 buffers x (in + out) of a (1, TC, HW) tile fit."""
    def fits(tc):
        return 4 * tc * HW * itemsize <= tile_budget_bytes

    cands = [tc for tc in range(128, C, 128) if C % tc == 0]
    cands.append(C)
    if max_channel_chunk is not None:
        limited = [tc for tc in cands if tc <= max_channel_chunk]
        if limited:
            cands = limited
    fitting = [tc for tc in cands if fits(tc)]
    return max(fitting) if fitting else min(cands)


# ----------------------------------------------------------------------------
# Fused single-pass kernel: squeeze + excite + rescale on a (TB, C, HW) block.
# ----------------------------------------------------------------------------

def _se_fused_kernel(x_ref, w1_ref, w2t_ref, o_ref):
    # x_ref / o_ref: (TB, C, HW)   w1_ref: (Cr, C)   w2t_ref: (Cr, C)
    hw = x_ref.shape[2]
    x = x_ref[...]
    # Squeeze: mean over the spatial (lane) axis, accumulated in f32.
    y = jnp.sum(x, axis=2, dtype=jnp.float32) * jnp.float32(1.0 / hw)       # (TB, C)
    # Excitation: Linear -> ReLU -> Linear -> Sigmoid on tiny vectors, in f32.
    w1 = w1_ref[...].astype(jnp.float32)
    w2t = w2t_ref[...].astype(jnp.float32)
    h = lax.dot_general(y, w1, dimension_numbers=(((1,), (1,)), ((), ())),
                        preferred_element_type=jnp.float32)                 # (TB, Cr)
    h = jnp.maximum(h, 0.0)
    s = jax.nn.sigmoid(jnp.dot(h, w2t, preferred_element_type=jnp.float32))  # (TB, C)
    # Channel-wise rescale in the streaming dtype; gate broadcast over lanes.
    o_ref[...] = x * s.astype(o_ref.dtype)[:, :, None]


# ----------------------------------------------------------------------------
# Chunked fallback kernels (large feature maps): gate pass + rescale pass.
# ----------------------------------------------------------------------------

def _se_gate_kernel(x_ref, w1_ref, w2t_ref, s_ref, h_acc):
    # x_ref: (1, TC, HW)  w1_ref: (Cr, TC)  w2t_ref: (Cr, C)
    # s_ref: (1, 1, C) f32   h_acc: VMEM (1, Cr) f32
    c = pl.program_id(1)
    hw = x_ref.shape[2]

    @pl.when(c == 0)
    def _():
        h_acc[...] = jnp.zeros_like(h_acc)

    # Partial squeeze for this channel chunk, folded directly into the first
    # linear layer (contraction over C is linear -> accumulate (1, Cr)).
    y_part = jnp.sum(x_ref[...], axis=2, dtype=jnp.float32) * jnp.float32(1.0 / hw)
    w1c = w1_ref[...].astype(jnp.float32)
    h_acc[...] += lax.dot_general(y_part, w1c,
                                  dimension_numbers=(((1,), (1,)), ((), ())),
                                  preferred_element_type=jnp.float32)

    @pl.when(c == pl.num_programs(1) - 1)
    def _():
        h = jnp.maximum(h_acc[...], 0.0)
        s = jnp.dot(h, w2t_ref[...].astype(jnp.float32),
                    preferred_element_type=jnp.float32)                     # (1, C)
        s_ref[...] = jax.nn.sigmoid(s)[:, None, :]


def _se_scale_kernel(x_ref, s_ref, o_ref):
    # x_ref / o_ref: (1, TC, HW)   s_ref: (1, 1, TC) f32
    gate = s_ref[...][:, 0, :].astype(o_ref.dtype)[:, :, None]              # (1, TC, 1)
    o_ref[...] = x_ref[...] * gate


# ----------------------------------------------------------------------------
# Wrapper
# ----------------------------------------------------------------------------

def se_module_forward(x, w1, w2, *, weight_dtype=None, force_chunked=False,
                      max_channel_chunk=None):
    """SEModule forward.  x: (B, C, H, W) NCHW.  w1: (C//r, C), w2: (C, C//r)
    in PyTorch nn.Linear layout (out_features, in_features).  Returns NCHW."""
    B, C, H, W = x.shape
    Cr = w1.shape[0]
    HW = H * W
    itemsize = jnp.dtype(x.dtype).itemsize

    if weight_dtype is None:
        # bf16 weight staging (half the residency/DMA) when activations are
        # already low precision; exact f32 path for f32 activations.
        weight_dtype = jnp.bfloat16 if itemsize < 4 else jnp.float32
    w1_s = w1.astype(weight_dtype)        # (Cr, C): C lane-dense
    w2t_s = w2.T.astype(weight_dtype)     # (Cr, C): C lane-dense
    wsize = jnp.dtype(weight_dtype).itemsize

    vmem_cap = _vmem_capacity_bytes()
    num_tc = _num_tensorcores(vmem_cap)
    tile_budget = int(vmem_cap * 0.40)        # v7x ~25 MiB, v5e/v6e ~51 MiB
    vmem_limit_cap = int(vmem_cap * 0.78)     # v7x ~50 MiB, v5e/v6e ~100 MiB

    # Free reshape (merges contiguous minor dims): no HBM transpose anywhere.
    x3 = x.reshape(B, C, HW)
    per_batch = C * HW * itemsize

    TB = 0 if force_chunked else _pick_tb(B, per_batch, tile_budget, num_tc)

    if TB > 0:
        # ---- Fused single-pass path -------------------------------------
        grid = (B // TB,)
        cost = pl.CostEstimate(
            flops=4 * B * Cr * C + 2 * B * HW * C,
            transcendentals=B * C,
            bytes_accessed=2 * B * HW * C * itemsize + 2 * Cr * C * wsize,
        )
        needed = 4 * TB * per_batch + 4 * Cr * C * wsize + (2 << 20)
        vmem_limit = int(min(vmem_limit_cap, max(32 * 1024 * 1024, needed)))

        out3 = pl.pallas_call(
            _se_fused_kernel,
            out_shape=jax.ShapeDtypeStruct((B, C, HW), x.dtype),
            grid_spec=pltpu.PrefetchScalarGridSpec(
                num_scalar_prefetch=0,
                grid=grid,
                in_specs=[
                    pl.BlockSpec((TB, C, HW), lambda b: (b, 0, 0)),
                    pl.BlockSpec((Cr, C), lambda b: (0, 0)),   # constant -> no re-DMA
                    pl.BlockSpec((Cr, C), lambda b: (0, 0)),   # constant -> no re-DMA
                ],
                out_specs=pl.BlockSpec((TB, C, HW), lambda b: (b, 0, 0)),
            ),
            compiler_params=pltpu.CompilerParams(
                dimension_semantics=("parallel",),
                vmem_limit_bytes=vmem_limit,
            ),
            cost_estimate=cost,
        )(x3, w1_s, w2t_s)
        return out3.reshape(B, C, H, W)

    # ---- Chunked fallback: per-batch slab exceeds the VMEM tile budget ----
    TC = _pick_tc(C, HW, itemsize, tile_budget, max_channel_chunk)
    nc = C // TC
    chunk_bytes = TC * HW * itemsize

    gate_vmem = int(min(vmem_limit_cap,
                        max(32 * 1024 * 1024,
                            2 * chunk_bytes + 2 * Cr * (TC + C) * wsize
                            + 2 * C * 4 + (2 << 20))))
    s = pl.pallas_call(
        _se_gate_kernel,
        out_shape=jax.ShapeDtypeStruct((B, 1, C), jnp.float32),
        grid_spec=pltpu.PrefetchScalarGridSpec(
            num_scalar_prefetch=0,
            grid=(B, nc),
            in_specs=[
                pl.BlockSpec((1, TC, HW), lambda b, c: (b, c, 0)),
                pl.BlockSpec((Cr, TC), lambda b, c: (0, c)),
                pl.BlockSpec((Cr, C), lambda b, c: (0, 0)),
            ],
            out_specs=pl.BlockSpec((1, 1, C), lambda b, c: (b, 0, 0)),
            scratch_shapes=[pltpu.VMEM((1, Cr), jnp.float32)],
        ),
        compiler_params=pltpu.CompilerParams(
            dimension_semantics=("parallel", "arbitrary"),
            vmem_limit_bytes=gate_vmem,
        ),
    )(x3, w1_s, w2t_s)

    scale_vmem = int(min(vmem_limit_cap,
                         max(32 * 1024 * 1024,
                             4 * chunk_bytes + 4 * TC * 4 + (2 << 20))))
    out3 = pl.pallas_call(
        _se_scale_kernel,
        out_shape=jax.ShapeDtypeStruct((B, C, HW), x.dtype),
        grid_spec=pltpu.PrefetchScalarGridSpec(
            num_scalar_prefetch=0,
            grid=(B, nc),
            in_specs=[
                pl.BlockSpec((1, TC, HW), lambda b, c: (b, c, 0)),
                pl.BlockSpec((1, 1, TC), lambda b, c: (b, 0, c)),
            ],
            out_specs=pl.BlockSpec((1, TC, HW), lambda b, c: (b, c, 0)),
        ),
        compiler_params=pltpu.CompilerParams(
            dimension_semantics=("parallel", "parallel"),
            vmem_limit_bytes=scale_vmem,
        ),
    )(x3, s)
    return out3.reshape(B, C, H, W)


def se_module_ref(x, w1, w2):
    """Pure-JAX reference matching the PyTorch forward exactly."""
    y = jnp.mean(x, axis=(2, 3))                 # AdaptiveAvgPool2d(1) -> view(b, c)
    y = jnp.maximum(y @ w1.T, 0.0)               # Linear(C, C//r, bias=False) + ReLU
    y = jax.nn.sigmoid(y @ w2.T)                 # Linear(C//r, C, bias=False) + Sigmoid
    return x * y[:, :, None, None]               # x * y.expand_as(x)


if __name__ == "__main__":
    key = jax.random.PRNGKey(0)
    kx, k1, k2, kx2, k3, k4 = jax.random.split(key, 6)

    # --- Test 1: fused single-pass path (typical SE shape, C multiple of 128).
    B, C, H, W = 4, 128, 7, 7
    reduction = 16
    Cr = C // reduction
    x = jax.random.normal(kx, (B, C, H, W), dtype=jnp.float32)
    # PyTorch Linear weight layout: (out_features, in_features).
    w1 = jax.random.normal(k1, (Cr, C), dtype=jnp.float32) * 0.1
    w2 = jax.random.normal(k2, (C, Cr), dtype=jnp.float32) * 0.1

    out = jax.block_until_ready(se_module_forward(x, w1, w2))
    ref = se_module_ref(x, w1, w2)
    assert out.shape == (B, C, H, W)
    assert jnp.allclose(out, ref, atol=1e-4, rtol=1e-4), "fused path mismatch"

    # --- Test 2: chunked fallback path (forced), validates the large-feature-
    # map handling (channel-chunked gate + rescale passes).
    B2, C2, H2, W2 = 2, 256, 4, 4
    Cr2 = C2 // reduction
    x2 = jax.random.normal(kx2, (B2, C2, H2, W2), dtype=jnp.float32)
    w1b = jax.random.normal(k3, (Cr2, C2), dtype=jnp.float32) * 0.1
    w2b = jax.random.normal(k4, (C2, Cr2), dtype=jnp.float32) * 0.1

    out2 = jax.block_until_ready(
        se_module_forward(x2, w1b, w2b, force_chunked=True, max_channel_chunk=128))
    ref2 = se_module_ref(x2, w1b, w2b)
    assert out2.shape == (B2, C2, H2, W2)
    assert jnp.allclose(out2, ref2, atol=1e-4, rtol=1e-4), "chunked path mismatch"

    print("KERNEL_OK")
</pallas_src>

<mosaic_0001>
module attributes {stable_mosaic.version = 11 : i64} {
  func.func @_se_fused_kernel(%arg0: i32, %arg1: memref<2x128x49xf32, #tpu.memory_space<vmem>>, %arg2: memref<8x128xf32, #tpu.memory_space<vmem>>, %arg3: memref<8x128xf32, #tpu.memory_space<vmem>>, %arg4: memref<2x128x49xf32, #tpu.memory_space<vmem>>) attributes {dimension_semantics = [#tpu.dimension_semantics<parallel>], iteration_bounds = array<i64: 2>, scalar_prefetch = 0 : i64, scratch_operands = 0 : i64, tpu.core_type = #tpu.core_type<tc>, window_params = [{transform_indices = @transform_0, window_bounds = array<i64: 2, 128, 49>}, {pipeline_mode = #tpu.pipeline_mode<synchronous>, transform_indices = @transform_1, window_bounds = array<i64: 8, 128>}, {pipeline_mode = #tpu.pipeline_mode<synchronous>, transform_indices = @transform_2, window_bounds = array<i64: 8, 128>}, {transform_indices = @transform_3, window_bounds = array<i64: 2, 128, 49>}]} {
    %c0 = arith.constant 0 : index
    %c0_0 = arith.constant 0 : index
    %c0_1 = arith.constant 0 : index
    %0 = vector.load %arg1[%c0, %c0_0, %c0_1] : memref<2x128x49xf32, #tpu.memory_space<vmem>>, vector<2x128x49xf32>
    %cst = arith.constant dense<0.000000e+00> : vector<2x128xf32>
    %1 = vector.multi_reduction <add>, %0, %cst [2] : vector<2x128x49xf32> to vector<2x128xf32>
    %cst_2 = arith.constant 0.0204081628 : f32
    %2 = vector.broadcast %cst_2 : f32 to vector<2x128xf32>
    %3 = arith.mulf %1, %2 : vector<2x128xf32>
    %c0_3 = arith.constant 0 : index
    %c0_4 = arith.constant 0 : index
    %4 = vector.load %arg2[%c0_3, %c0_4] : memref<8x128xf32, #tpu.memory_space<vmem>>, vector<8x128xf32>
    %c0_5 = arith.constant 0 : index
    %c0_6 = arith.constant 0 : index
    %5 = vector.load %arg3[%c0_5, %c0_6] : memref<8x128xf32, #tpu.memory_space<vmem>>, vector<8x128xf32>
    %cst_7 = arith.constant dense<0.000000e+00> : vector<2x8xf32>
    %6 = tpu.matmul %3, %4, %cst_7 {dimension_numbers = #tpu.dot_dimension_numbers<[1], [1], [0], [0], [0, 0, 1, 0], [], []>} : vector<2x128xf32>, vector<8x128xf32>, vector<2x8xf32> -> vector<2x8xf32>
    %cst_8 = arith.constant 0.000000e+00 : f32
    %7 = vector.broadcast %cst_8 : f32 to vector<2x8xf32>
    %8 = arith.maximumf %6, %7 : vector<2x8xf32>
    %cst_9 = arith.constant dense<0.000000e+00> : vector<2x128xf32>
    %9 = tpu.matmul %8, %5, %cst_9 {dimension_numbers = #tpu.dot_dimension_numbers<[1], [0], [0], [1], [0, 0, 1, 1], [], []>} : vector<2x8xf32>, vector<8x128xf32>, vector<2x128xf32> -> vector<2x128xf32>
    %10 = arith.negf %9 : vector<2x128xf32>
    %11 = math.exp %10 : vector<2x128xf32>
    %cst_10 = arith.constant 1.000000e+00 : f32
    %12 = vector.broadcast %cst_10 : f32 to vector<2x128xf32>
    %13 = arith.addf %12, %11 : vector<2x128xf32>
    %14 = arith.divf %12, %13 : vector<2x128xf32>
    %15 = vector.shape_cast %14 : vector<2x128xf32> to vector<2x128x1xf32>
    %16 = vector.broadcast %15 : vector<2x128x1xf32> to vector<2x128x49xf32>
    %17 = arith.mulf %0, %16 : vector<2x128x49xf32>
    %c0_11 = arith.constant 0 : index
    %c0_12 = arith.constant 0 : index
    %c0_13 = arith.constant 0 : index
    %18 = vector.load %arg4[%c0_11, %c0_12, %c0_13] : memref<2x128x49xf32, #tpu.memory_space<vmem>>, vector<2x128x49xf32>
    tpu.vector_store %arg4[%c0_11, %c0_12, %c0_13], %17 {strides = array<i32>} : memref<2x128x49xf32, #tpu.memory_space<vmem>>, vector<2x128x49xf32>,
    return
  }
  func.func @transform_0(%arg0: i32) -> (i32, i32, i32) {
    %c0_i32 = arith.constant 0 : i32
    %c0_i32_0 = arith.constant 0 : i32
    %c0_i32_1 = arith.constant 0 : i32
    return %arg0, %c0_i32, %c0_i32_0 : i32, i32, i32
  }
  func.func @transform_1(%arg0: i32) -> (i32, i32) {
    %c0_i32 = arith.constant 0 : i32
    %c0_i32_0 = arith.constant 0 : i32
    %c0_i32_1 = arith.constant 0 : i32
    return %c0_i32, %c0_i32_0 : i32, i32
  }
  func.func @transform_2(%arg0: i32) -> (i32, i32) {
    %c0_i32 = arith.constant 0 : i32
    %c0_i32_0 = arith.constant 0 : i32
    %c0_i32_1 = arith.constant 0 : i32
    return %c0_i32, %c0_i32_0 : i32, i32
  }
  func.func @transform_3(%arg0: i32) -> (i32, i32, i32) {
    %c0_i32 = arith.constant 0 : i32
    %c0_i32_0 = arith.constant 0 : i32
    %c0_i32_1 = arith.constant 0 : i32
    return %arg0, %c0_i32, %c0_i32_0 : i32, i32, i32
  }
}

</mosaic_0001>

<bundles_post_ra>
// kernel: tpu_custom_call.1
= control target key start
LH: loop header
LB: loop body
LE: loop exit
PB: predicated region body
PF: predicated region fallthrough
CT: control target
= control target key end

     0   :  { %s1049_s12 = smov 0   ;;  %s1467_s0 = inlined_call_operand.vmem [shape: f32[4,128,49], index: 0, kind: input, shape index: {}]   ;;  %s1468_s1 = inlined_call_operand.vmem [shape: f32[8,128], index: 1, kind: input, shape index: {}]   ;;  %s1469_s2 = inlined_call_operand.vmem [shape: f32[8,128], index: 2, kind: input, shape index: {}]   ;;  %s1470_s3 = inlined_call_operand.vmem [shape: f32[4,128,49], index: 3, kind: output, shape index: {}]  }
   0x1 LB: > { %s974_s13 = sadd.s32 4294967295, %s1025_s12   ;;  %p978_p0 = scmp.ge.s32.totalorder %s1025_s12, 1  ;;  %s1025_s12 = sphi %s1049_s12, %s13_s12  }
   0x2   : > { %p139_p1 = scmp.lt.s32.totalorder %s1025_s12, 3 }
   0x4   : > { %p140_p2 = pnand %p978_p0, %p139_p1 }
   0x6   : > { %143 = sbr.rel (%p140_p2) target bundleno = 866 (0x362), region = 32 }
   0xd   : > { %s979_s14 = sshll.u32 %s974_s13, 1  ;;  %vm211_vm0 = vcmask 400384   ;;  %vm1028_vm1 = vmmov 0   ;;  %vm385_vm2 = vcmask 130112   ;;  %vm392_vm3 = vcmask 195712  }
   0xe   : > { %p166_p3 = scmp.lt.s32.totalorder %s979_s14, 3  ;;  %vm399_vm4 = vcmask 261312   ;;  %vm406_vm5 = vcmask 326912   ;;  %vm413_vm6 = vcmask 392512   ;;  %vm420_vm7 = vcmask 458112  }
   0xf   : > { %vm427_vm8 = vcmask 523712   ;;  %vm434_vm9 = vcmask 589312   ;;  %vm441_vm10 = vcmask 654912   ;;  %vm448_vm11 = vcmask 720512  }
  0x10   : > { %s1535_s14 = smov (!%p166_p3, %s979_s14), 3  ;;  %vm455_vm12 = vcmask 786112   ;;  %vm462_vm13 = vcmask 851712   ;;  %vm469_vm14 = vcmask 917312   ;;  %vm476_vm15 = vcmask 982912  }
  0x11   : > { %s989_s15 = sshll.u32 %s1535_s14, 7 }
  0x12   : > { %s1065_s18 = scalar_lea.vmem %s1467_s0, %s989_s15  ;;  %s1366_s25 = scalar_lea.vmem %s1470_s3, %s989_s15 }
  0x13   : > { %v1068_v0 = vld [vmem:[%s1065_s18 + $0x80] sm:$0xff]  ;;  %v1074_v2 = vld [vmem:[%s1065_s18 + $0x88] sm:$0xff]  ;;  %v1088_v8 = vld [vmem:[%s1065_s18 + $0x90] sm:$0xff] }
  0x14   : > { %1492 = vst [vmem:[#allocation2_spill] sm:$0xff] %v1068_v0  ;;  %v1071_v1 = vld [vmem:[%s1065_s18] sm:$0xff]  ;;  %1493 = vst [vmem:[#allocation3_spill] sm:$0xff] %v1074_v2  ;;  %v260_v3 = vsel %vm211_vm0, %v1068_v0, 0.0  ;;  %v1081_v5 = vld [vmem:[%s1065_s18 + $0x8] sm:$0xff]  ;;  %v263_v6 = vsel %vm211_vm0, %v1074_v2, 0.0 }
  0x15   : > { %v212_v4 = vsel %vm211_vm0, %v1071_v1, 0.0  ;;  %261 = vadd.xlane.f32.xlu1 %v260_v3  ;;  %v215_v7 = vsel %vm211_vm0, %v1081_v5, 0.0  ;;  %1494 = vst [vmem:[#allocation4_spill] sm:$0xff] %v1088_v8  ;;  %v1091_v9 = vld [vmem:[%s1065_s18 + $0x10] sm:$0xff]  ;;  %v266_v10 = vsel %vm211_vm0, %v1088_v8, 0.0  ;;  %v1098_v12 = vld [vmem:[%s1065_s18 + $0x98] sm:$0xff] }
  0x16   : > { %213 = vadd.xlane.f32.xlu0 %v212_v4  ;;  %v218_v11 = vsel %vm211_vm0, %v1091_v9, 0.0  ;;  %1495 = vst [vmem:[#allocation5_spill] sm:$0xff] %v1098_v12  ;;  %v1101_v13 = vld [vmem:[%s1065_s18 + $0x18] sm:$0xff]  ;;  %v269_v14 = vsel %vm211_vm0, %v1098_v12, 0.0  ;;  %v1108_v16 = vld [vmem:[%s1065_s18 + $0xa0] sm:$0xff]  ;;  %v1118_v20 = vld [vmem:[%s1065_s18 + $0xa8] sm:$0xff] }
  0x17   : > { %v221_v15 = vsel %vm211_vm0, %v1101_v13, 0.0  ;;  %1496 = vst [vmem:[#allocation6_spill] sm:$0xff] %v1108_v16  ;;  %v1111_v17 = vld [vmem:[%s1065_s18 + $0x20] sm:$0xff]  ;;  %v272_v18 = vsel %vm211_vm0, %v1108_v16, 0.0  ;;  %1497 = vst [vmem:[#allocation7_spill] sm:$0xff] %v1118_v20  ;;  %v1121_v21 = vld [vmem:[%s1065_s18 + $0x28] sm:$0xff] }
  0x18   : > { %v224_v19 = vsel %vm211_vm0, %v1111_v17, 0.0  ;;  %v275_v22 = vsel %vm211_vm0, %v1118_v20, 0.0  ;;  %v227_v23 = vsel %vm211_vm0, %v1121_v21, 0.0  ;;  %v1128_v24 = vld [vmem:[%s1065_s18 + $0xb0] sm:$0xff]  ;;  %v1138_v28 = vld [vmem:[%s1065_s18 + $0xb8] sm:$0xff]  ;;  %v1148_v32 = vld [vmem:[%s1065_s18 + $0xc0] sm:$0xff] }
  0x19   : > { %264 = vadd.xlane.f32.xlu1 %v263_v6  ;;  %1498 = vst [vmem:[#allocation8_spill] sm:$0xff] %v1128_v24  ;;  %v1131_v25 = vld [vmem:[%s1065_s18 + $0x30] sm:$0xff]  ;;  %v278_v26 = vsel %vm211_vm0, %v1128_v24, 0.0  ;;  %1499 = vst [vmem:[#allocation9_spill] sm:$0xff] %v1138_v28  ;;  %v1141_v29 = vld [vmem:[%s1065_s18 + $0x38] sm:$0xff]  ;;  %v281_v30 = vsel %vm211_vm0, %v1138_v28, 0.0 }
  0x1a   : > { %216 = vadd.xlane.f32.xlu0 %v215_v7  ;;  %v230_v27 = vsel %vm211_vm0, %v1131_v25, 0.0  ;;  %v233_v31 = vsel %vm211_vm0, %v1141_v29, 0.0  ;;  %1500 = vst [vmem:[#allocation10_spill] sm:$0xff] %v1148_v32  ;;  %v1151_v33 = vld [vmem:[%s1065_s18 + $0x40] sm:$0xff]  ;;  %v284_v34 = vsel %vm211_vm0, %v1148_v32, 0.0  ;;  %v1158_v36 = vld [vmem:[%s1065_s18 + $0xc8] sm:$0xff] }
  0x1b   : > { %v236_v35 = vsel %vm211_vm0, %v1151_v33, 0.0  ;;  %1501 = vst [vmem:[#allocation11_spill] sm:$0xff] %v1158_v36  ;;  %v1161_v37 = vld [vmem:[%s1065_s18 + $0x48] sm:$0xff]  ;;  %v287_v38 = vsel %vm211_vm0, %v1158_v36, 0.0  ;;  %v1168_v40 = vld [vmem:[%s1065_s18 + $0xd0] sm:$0xff]  ;;  %v1178_v44 = vld [vmem:[%s1065_s18 + $0xd8] sm:$0xff] }
  0x1c   : > { %v239_v39 = vsel %vm211_vm0, %v1161_v37, 0.0  ;;  %1502 = vst [vmem:[#allocation12_spill] sm:$0xff] %v1168_v40  ;;  %v1171_v41 = vld [vmem:[%s1065_s18 + $0x50] sm:$0xff]  ;;  %v290_v42 = vsel %vm211_vm0, %v1168_v40, 0.0  ;;  %1503 = vst [vmem:[#allocation13_spill] sm:$0xff] %v1178_v44  ;;  %v1181_v45 = vld [vmem:[%s1065_s18 + $0x58] sm:$0xff] }
  0x1d   : > { %267 = vadd.xlane.f32.xlu1 %v266_v10  ;;  %v242_v43 = vsel %vm211_vm0, %v1171_v41, 0.0  ;;  %1504 = vst [vmem:[#allocation14_spill] sm:$0xff] %v1181_v45  ;;  %v293_v46 = vsel %vm211_vm0, %v1178_v44, 0.0  ;;  %v245_v47 = vsel %vm211_vm0, %v1181_v45, 0.0  ;;  %v1188_v48 = vld [vmem:[%s1065_s18 + $0xe0] sm:$0xff]  ;;  %v1198_v52 = vld [vmem:[%s1065_s18 + $0xe8] sm:$0xff] }
  0x1e   : > { %219 = vadd.xlane.f32.xlu0 %v218_v11  ;;  %1505 = vst [vmem:[#allocation15_spill] sm:$0xff] %v1188_v48  ;;  %v1191_v49 = vld [vmem:[%s1065_s18 + $0x60] sm:$0xff]  ;;  %v296_v50 = vsel %vm211_vm0, %v1188_v48, 0.0  ;;  %1507 = vst [vmem:[#allocation17_spill] sm:$0xff] %v1198_v52  ;;  %v1201_v53 = vld [vmem:[%s1065_s18 + $0x68] sm:$0xff]  ;;  %v299_v54 = vsel %vm211_vm0, %v1198_v52, 0.0 }
  0x1f   : > { %1506 = vst [vmem:[#allocation16_spill] sm:$0xff] %v1191_v49  ;;  %v248_v51 = vsel %vm211_vm0, %v1191_v49, 0.0  ;;  %1508 = vst [vmem:[#allocation18_spill] sm:$0xff] %v1201_v53  ;;  %v251_v55 = vsel %vm211_vm0, %v1201_v53, 0.0  ;;  %v1208_v56 = vld [vmem:[%s1065_s18 + $0xf0] sm:$0xff]  ;;  %v1218_v60 = vld [vmem:[%s1065_s18 + $0xf8] sm:$0xff] }
  0x20   : > { %1509 = vst [vmem:[#allocation19_spill] sm:$0xff] %v1208_v56  ;;  %v1211_v57 = vld [vmem:[%s1065_s18 + $0x70] sm:$0xff]  ;;  %v302_v58 = vsel %vm211_vm0, %v1208_v56, 0.0  ;;  %1511 = vst [vmem:[#allocation21_spill] sm:$0xff] %v1218_v60  ;;  %v1221_v61 = vld [vmem:[%s1065_s18 + $0x78] sm:$0xff]  ;;  %v305_v62 = vsel %vm211_vm0, %v1218_v60, 0.0 }
  0x21   : > { %270 = vadd.xlane.f32.xlu1 %v269_v14  ;;  %1510 = vst [vmem:[#allocation20_spill] sm:$0xff] %v1211_v57  ;;  %v254_v59 = vsel %vm211_vm0, %v1211_v57, 0.0  ;;  %1512 = vst [vmem:[#allocation22_spill] sm:$0xff] %v1221_v61  ;;  %v257_v63 = vsel %vm211_vm0, %v1221_v61, 0.0  ;;  %v1027_v3 = vmov 0.0   ;;  %v340_v4 = vld [vmem:[%s1468_s1] sm:$0xff] }
  0x22   : > { %222 = vadd.xlane.f32.xlu0 %v221_v15  ;;  %995 = vmatprep.subr.mxu0 %v1027_v3 }
  0x23   : > { %1000 = vmatprep.subr.mxu1 %v1027_v3  ;;  %996 = vmatpush3.xpose.msra.mxu0 %v340_v4 }
  0x24   : > { %997 = vmatprep.mubr.msk.f32.mxu0 %vm1028_vm1, %v1027_v3  ;;  %1002 = vmatprep.mubr.msk.f32.mxu1 %vm1028_vm1, %v1027_v3  ;;  %vm483_vm1 = vcmask 1048512  }
  0x25   : > { %273 = vadd.xlane.f32.xlu1 %v272_v18 }
  0x26   : > { %225 = vadd.xlane.f32.xlu0 %v224_v19 }
  0x29   : > { %276 = vadd.xlane.f32.xlu1 %v275_v22 }
  0x2a   : > { %228 = vadd.xlane.f32.xlu0 %v227_v23 }
  0x2d   : > { %279 = vadd.xlane.f32.xlu1 %v278_v26 }
  0x2e   : > { %231 = vadd.xlane.f32.xlu0 %v230_v27 }
  0x31   : > { %282 = vadd.xlane.f32.xlu1 %v281_v30 }
  0x32   : > { %234 = vadd.xlane.f32.xlu0 %v233_v31 }
  0x35   : > { %285 = vadd.xlane.f32.xlu1 %v284_v34  ;;  %v374_v34 = vlaneseq }
  0x36   : > { %237 = vadd.xlane.f32.xlu0 %v236_v35 }
  0x39   : > { %288 = vadd.xlane.f32.xlu1 %v287_v38 }
  0x3a   : > { %240 = vadd.xlane.f32.xlu0 %v239_v39  ;;  %v375_v39 = vand.u32 127, %v374_v34 }
  0x3c   : > { %v443_v4 = vadd.s32 4294967216, %v375_v39  ;;  %v450_v48 = vadd.s32 4294967208, %v375_v39  ;;  %v464_v28 = vadd.s32 4294967192, %v375_v39 }
  0x3d   : > { %291 = vadd.xlane.f32.xlu1 %v290_v42  ;;  %v1238_v42 = vshrl.u32 %v374_v34, 7 }
  0x3e   : > { %243 = vadd.xlane.f32.xlu0 %v242_v43  ;;  %v380_v43 = vadd.s32 4294967288, %v375_v39 }
  0x3f   : > { %v378_v3 = vsub.s32 %v375_v39, %v1238_v42  ;;  %v1278_v61 = vsub.s32 %v450_v48, %v1238_v42 }
  0x40   : > { %v383_v60 = vsub.s32 %v380_v43, %v1238_v42  ;;  %v457_v43 = vadd.s32 4294967200, %v375_v39 }
  0x41   : > { %294 = vadd.xlane.f32.xlu1 %v293_v46  ;;  %v387_v46 = vadd.s32 4294967280, %v375_v39 }
  0x42   : > { %246 = vadd.xlane.f32.xlu0 %v245_v47  ;;  %v394_v47 = vadd.s32 4294967272, %v375_v39 }
  0x43   : > { %v1247_v34 = vsub.s32 %v387_v46, %v1238_v42 }
  0x44   : > { %v1250_v52 = vsub.s32 %v394_v47, %v1238_v42 }
  0x45   : > { %297 = vadd.xlane.f32.xlu1 %v296_v50 }
  0x46   : > { %249 = vadd.xlane.f32.xlu0 %v248_v51 }
  0x49   : > { %300 = vadd.xlane.f32.xlu1 %v299_v54  ;;  %v401_v54 = vadd.s32 4294967264, %v375_v39 }
  0x4a   : > { %252 = vadd.xlane.f32.xlu0 %v251_v55  ;;  %v408_v55 = vadd.s32 4294967256, %v375_v39 }
  0x4b   : > { %v1257_v36 = vsub.s32 %v401_v54, %v1238_v42 }
  0x4c   : > { %v1260_v40 = vsub.s32 %v408_v55, %v1238_v42  ;;  %v1275_v55 = vsub.s32 %v443_v4, %v1238_v42 }
  0x4d   : > { %303 = vadd.xlane.f32.xlu1 %v302_v58  ;;  %v415_v58 = vadd.s32 4294967248, %v375_v39 }
  0x4e   : > { %255 = vadd.xlane.f32.xlu0 %v254_v59  ;;  %v422_v59 = vadd.s32 4294967240, %v375_v39 }
  0x4f   : > { %v1263_v46 = vsub.s32 %v415_v58, %v1238_v42 }
  0x50   : > { %v1266_v47 = vsub.s32 %v422_v59, %v1238_v42 }
  0x51   : > { %306 = vadd.xlane.f32.xlu1 %v305_v62  ;;  %v429_v62 = vadd.s32 4294967232, %v375_v39 }
  0x52   : > { %258 = vadd.xlane.f32.xlu0 %v257_v63  ;;  %v436_v63 = vadd.s32 4294967224, %v375_v39 }
  0x53   : > { %v1269_v32 = vsub.s32 %v429_v62, %v1238_v42 }
  0x54   : > { %v1272_v20 = vsub.s32 %v436_v63, %v1238_v42  ;;  %v1281_v63 = vsub.s32 %v457_v43, %v1238_v42 }
  0xa2   : > { %v262_v6 = vpop.xlane.xlu1 %261 }
  0xa3   : > { %v214_v7 = vpop.xlane.xlu0 %213  ;;  %v324_v54 = vmul.f32 0.020408163, %v262_v6  ;;  %v1284_v6 = vsub.s32 %v464_v28, %v1238_v42 }
  0xa4   : > { %v308_v16 = vmul.f32 0.020408163, %v214_v7  ;;  %v471_v7 = vadd.s32 4294967184, %v375_v39 }
  0xa5   : > { %v488_v45 = vrot.slane %v324_v54, %v378_v3 }
  0xa6   : > { %v265_v10 = vpop.xlane.xlu1 %264  ;;  %v379_v48 = vrot.slane %v308_v16, %v378_v3  ;;  %v1295_v16 = vsub.s32 %v471_v7, %v1238_v42 }
  0xa7   : > { %v217_v11 = vpop.xlane.xlu0 %216  ;;  %v325_v24 = vmul.f32 0.020408163, %v265_v10 }
  0xa8   : > { %v309_v12 = vmul.f32 0.020408163, %v217_v11 }
  0xaa   : > { %v268_v14 = vpop.xlane.xlu1 %267  ;;  %v384_v4 = vrot.slane %v309_v12, %v383_v60 }
  0xab   : > { %v220_v15 = vpop.xlane.xlu0 %219  ;;  %v326_v2 = vmul.f32 0.020408163, %v268_v14  ;;  %v478_v14 = vadd.s32 4294967176, %v375_v39 }
  0xac   : > { %v310_v58 = vmul.f32 0.020408163, %v220_v15  ;;  %v492_v15 = vrot.slane %v325_v24, %v383_v60 }
  0xae   : > { %v271_v18 = vpop.xlane.xlu1 %270  ;;  %v493_v60 = vsel %vm385_vm2, %v492_v15, %v488_v45 }
  0xaf   : > { %v223_v19 = vpop.xlane.xlu0 %222  ;;  %v327_v62 = vmul.f32 0.020408163, %v271_v18  ;;  %v497_v18 = vrot.slane %v326_v2, %v1247_v34  ;;  %v1298_v2 = vsub.s32 %v478_v14, %v1238_v42 }
  0xb0   : > { %v311_v0 = vmul.f32 0.020408163, %v223_v19  ;;  %v391_v19 = vrot.slane %v310_v58, %v1247_v34 }
  0xb1   : > { %v502_v28 = vrot.slane %v327_v62, %v1250_v52 }
  0xb2   : > { %v274_v22 = vpop.xlane.xlu1 %273 }
  0xb3   : > { %v226_v23 = vpop.xlane.xlu0 %225  ;;  %v328_v10 = vmul.f32 0.020408163, %v274_v22  ;;  %v398_v22 = vrot.slane %v311_v0, %v1250_v52 }
  0xb4   : > { %v312_v11 = vmul.f32 0.020408163, %v226_v23 }
  0xb5   : > { %v507_v12 = vrot.slane %v328_v10, %v1257_v36 }
  0xb6   : > { %v277_v26 = vpop.xlane.xlu1 %276  ;;  %v405_v24 = vrot.slane %v312_v11, %v1257_v36 }
  0xb7   : > { %v229_v27 = vpop.xlane.xlu0 %228  ;;  %v329_v53 = vmul.f32 0.020408163, %v277_v26  ;;  %v386_v26 = vsel %vm385_vm2, %v384_v4, %v379_v48  ;;  %vm564_vm2 = vcmask 1041409  }
  0xb8   : > { %v313_v57 = vmul.f32 0.020408163, %v229_v27  ;;  %v498_v27 = vsel %vm392_vm3, %v497_v18, %v493_v60 }
  0xb9   : > { %v512_v0 = vrot.slane %v329_v53, %v1260_v40  ;;  %v503_v45 = vsel %vm399_vm4, %v502_v28, %v498_v27 }
  0xba   : > { %v1230_v30 = vpop.xlane.xlu1 %279  ;;  %v412_v52 = vrot.slane %v313_v57, %v1260_v40  ;;  %v508_v57 = vsel %vm406_vm5, %v507_v12, %v503_v45 }
  0xbb   : > { %v1232_v31 = vpop.xlane.xlu0 %231  ;;  %v330_v23 = vmul.f32 0.020408163, %v1230_v30  ;;  %v393_v30 = vsel %vm392_vm3, %v391_v19, %v386_v26  ;;  %v513_v62 = vsel %vm413_vm6, %v512_v0, %v508_v57  ;;  %vm638_vm3 = vcmask 64512  }
  0xbc   : > { %v314_v39 = vmul.f32 0.020408163, %v1232_v31  ;;  %v400_v54 = vsel %vm399_vm4, %v398_v22, %v393_v30 }
  0xbd   : > { %v517_v53 = vrot.slane %v330_v23, %v1263_v46  ;;  %v407_v58 = vsel %vm406_vm5, %v405_v24, %v400_v54 }
  0xbe   : > { %v1234_v35 = vpop.xlane.xlu1 %282  ;;  %v419_v40 = vrot.slane %v314_v39, %v1263_v46  ;;  %v414_v10 = vsel %vm413_vm6, %v412_v52, %v407_v58 }
  0xbf   : > { %v1236_v38 = vpop.xlane.xlu0 %234  ;;  %v331_v36 = vmul.f32 0.020408163, %v1234_v35 }
  0xc0   : > { %v315_v31 = vmul.f32 0.020408163, %v1236_v38  ;;  %v421_v18 = vsel %vm420_vm7, %v419_v40, %v414_v10 }
  0xc1   : > { %v522_v46 = vrot.slane %v331_v36, %v1266_v47 }
  0xc2   : > { %v1240_v50 = vpop.xlane.xlu1 %285  ;;  %v426_v14 = vrot.slane %v315_v31, %v1266_v47 }
  0xc3   : > { %v1242_v51 = vpop.xlane.xlu0 %237  ;;  %v332_v35 = vmul.f32 0.020408163, %v1240_v50 }
  0xc4   : > { %v316_v38 = vmul.f32 0.020408163, %v1242_v51  ;;  %v518_v51 = vsel %vm420_vm7, %v517_v53, %v513_v62  ;;  %v428_v24 = vsel %vm427_vm8, %v426_v14, %v421_v18 }
  0xc5   : > { %v523_v12 = vsel %vm427_vm8, %v522_v46, %v518_v51  ;;  %v341_v51 = vld [vmem:[%s1469_s2] sm:$0xff] }
  0xc6   : > { %v1252_v56 = vpop.xlane.xlu1 %288  ;;  %1001 = vmatpush3.msra.mxu1 %v341_v51 }
  0xc7   : > { %v1254_v44 = vpop.xlane.xlu0 %240  ;;  %v333_v11 = vmul.f32 0.020408163, %v1252_v56  ;;  %v527_v56 = vrot.slane %v332_v35, %v1269_v32 }
  0xc8   : > { %v317_v7 = vmul.f32 0.020408163, %v1254_v44  ;;  %v433_v44 = vrot.slane %v316_v38, %v1269_v32 }
  0xc9   : > { %v532_v47 = vrot.slane %v333_v11, %v1272_v20 }
  0xca   : > { %v292_v8 = vpop.xlane.xlu1 %291  ;;  %v435_v30 = vsel %vm434_vm9, %v433_v44, %v428_v24 }
  0xcb   : > { %v244_v59 = vpop.xlane.xlu0 %243  ;;  %v334_v15 = vmul.f32 0.020408163, %v292_v8  ;;  %v440_v8 = vrot.slane %v317_v7, %v1272_v20  ;;  %v528_v20 = vsel %vm434_vm9, %v527_v56, %v523_v12 }
  0xcc   : > { %v318_v4 = vmul.f32 0.020408163, %v244_v59 }
  0xce   : > { %v295_v43 = vpop.xlane.xlu1 %294 }
  0xcf   : > { %v247_v49 = vpop.xlane.xlu0 %246  ;;  %v335_v19 = vmul.f32 0.020408163, %v295_v43  ;;  %v537_v43 = vrot.slane %v334_v15, %v1275_v55 }
  0xd0   : > { %v319_v28 = vmul.f32 0.020408163, %v247_v49  ;;  %v447_v49 = vrot.slane %v318_v4, %v1275_v55  ;;  %v442_v55 = vsel %vm441_vm10, %v440_v8, %v435_v30 }
  0xd1   : > { %v542_v32 = vrot.slane %v335_v19, %v1278_v61 }
  0xd2   : > { %v298_v3 = vpop.xlane.xlu1 %297  ;;  %v454_v0 = vrot.slane %v319_v28, %v1278_v61  ;;  %v449_v54 = vsel %vm448_vm11, %v447_v49, %v442_v55  ;;  %v1513_v55 = vld [vmem:[#allocation16_spill] sm:$0xff] }
  0xd3   : > { %v250_v34 = vpop.xlane.xlu0 %249  ;;  %v336_v22 = vmul.f32 0.020408163, %v298_v3  ;;  %v533_v3 = vsel %vm441_vm10, %v532_v47, %v528_v20  ;;  %v720_v47 = vsub.s32 0, %v1238_v42 }
  0xd4   : > { %v320_v23 = vmul.f32 0.020408163, %v250_v34  ;;  %v538_v61 = vsel %vm448_vm11, %v537_v43, %v533_v3  ;;  %v456_v35 = vsel %vm455_vm12, %v454_v0, %v449_v54  ;;  %v1515_v54 = vld [vmem:[#allocation20_spill] sm:$0xff] }
  0xd5   : > { %v547_v36 = vrot.slane %v336_v22, %v1281_v63 }
  0xd6   : > { %v301_v50 = vpop.xlane.xlu1 %300  ;;  %v461_v31 = vrot.slane %v320_v23, %v1281_v63  ;;  %v543_v63 = vsel %vm455_vm12, %v542_v32, %v538_v61 }
  0xd7   : > { %v253_v48 = vpop.xlane.xlu0 %252  ;;  %v337_v59 = vmul.f32 0.020408163, %v301_v50  ;;  %v548_v10 = vsel %vm462_vm13, %v547_v36, %v543_v63  ;;  %v1517_v63 = vld [vmem:[#allocation2_spill] sm:$0xff] }
  0xd8   : > { %v321_v39 = vmul.f32 0.020408163, %v253_v48 }
  0xd9   : > { %v552_v34 = vrot.slane %v337_v59, %v1284_v6 }
  0xda   : > { %v304_v60 = vpop.xlane.xlu1 %303  ;;  %v468_v45 = vrot.slane %v321_v39, %v1284_v6  ;;  %v463_v6 = vsel %vm462_vm13, %v461_v31, %v456_v35  ;;  %v787_v39 = vsub.s32 1, %v1238_v42 }
  0xdb   : > { %v256_v26 = vpop.xlane.xlu0 %255  ;;  %v338_v52 = vmul.f32 0.020408163, %v304_v60  ;;  %v553_v11 = vsel %vm469_vm14, %v552_v34, %v548_v10  ;;  %v1518_v10 = vld [vmem:[#allocation22_spill] sm:$0xff] }
  0xdc   : > { %v322_v27 = vmul.f32 0.020408163, %v256_v26  ;;  %v470_v7 = vsel %vm469_vm14, %v468_v45, %v463_v6 }
  0xdd   : > { %v557_v53 = vrot.slane %v338_v52, %v1295_v16 }
  0xde   : > { %v475_v40 = vrot.slane %v322_v27, %v1295_v16  ;;  %v307_v57 = vpop.xlane.xlu1 %306 }
  0xdf   : > { %v259_v58 = vpop.xlane.xlu0 %258  ;;  %v339_v38 = vmul.f32 0.020408163, %v307_v57  ;;  %v558_v15 = vsel %vm476_vm15, %v557_v53, %v553_v11  ;;  %v1516_v57 = vld [vmem:[#allocation18_spill] sm:$0xff]  ;;  %v1519_v11 = vld [vmem:[#allocation4_spill] sm:$0xff] }
  0xe0   : > { %v323_v62 = vmul.f32 0.020408163, %v259_v58  ;;  %v477_v14 = vsel %vm476_vm15, %v475_v40, %v470_v7 }
  0xe1   : > { %v562_v16 = vrot.slane %v339_v38, %v1298_v2 }
  0xe2   : > { %v482_v46 = vrot.slane %v323_v62, %v1298_v2 }
  0xe3   : > { %v563_v50 = vsel %vm483_vm1, %v562_v16, %v558_v15 }
  0xe4   : > { %v484_v4 = vsel %vm483_vm1, %v482_v46, %v477_v14  ;;  %v1520_v14 = vld [vmem:[#allocation3_spill] sm:$0xff] }
  0xe5   : > { %v565_v48 = vsel %vm564_vm2, %v563_v50, %v484_v4  ;;  %v1521_v4 = vld [vmem:[#allocation6_spill] sm:$0xff] }
  0xe6   : > { %998 = vmatmul.mubr.f32.vlgmr.msra.gmra.mrb[0].mxu0 %v565_v48 }
 0x1b9   : > { %v633_v18 = vpop.f32.mrb[0].mxu0 }
 0x1ba   : > { %v637_v19 = vmax.f32 %v633_v18, 0.0  ;;  %v999_v28 = vpop.f32.mrb[1].mxu0  ;;  %v1522_v18 = vld [vmem:[#allocation5_spill] sm:$0xff] }
 0x1bb   : > { %v1523_v28 = vld [vmem:[#allocation8_spill] sm:$0xff] }
 0x1bc   : > { %1003 = vmatmul.mubr.msk.f32.vlgmr.msra.gmra.mrb[0].mxu1 %vm638_vm3, %v637_v19 }
 0x28f   : > { %v708_v56 = vpop.f32.mrb[0].mxu1 }
 0x290   : > { %v986_v2 = vmul.f32 -1.442695, %v708_v56  ;;  %v1004_v44 = vpop.f32.mrb[1].mxu1 }
 0x292   : > { %1015 = vpow2.f32 %v986_v2 }
 0x29c   : > { %v1016_v22 = vpop.eup %1015 }
 0x29d   : > { %v715_v23 = vadd.f32 1.0, %v1016_v22  ;;  %v1524_v22 = vld [vmem:[#allocation7_spill] sm:$0xff] }
 0x29f   : > { %1017 = vrcp.f32 %v715_v23 }
 0x2a9   : > { %v1018_v8 = vpop.eup %1017 }
 0x2aa   : > { %v721_v59 = vrot.slane %v1018_v8, %v720_v47  ;;  %v788_v12 = vrot.slane %v1018_v8, %v787_v39  ;;  %v1525_v47 = vld [vmem:[#allocation10_spill] sm:$0xff] }
 0x2ac   : > { %727 = vbcast.lane.b32.xlu1 %v721_v59, 264  ;;  %723 = vbcast.lane.b32.xlu0 %v721_v59, 256 }
 0x2b0   : > { %731 = vbcast.lane.b32.xlu1 %v721_v59, 272  ;;  %739 = vbcast.lane.b32.xlu0 %v721_v59, 288 }
 0x2b4   : > { %735 = vbcast.lane.b32.xlu1 %v721_v59, 280  ;;  %747 = vbcast.lane.b32.xlu0 %v721_v59, 304 }
 0x2b8   : > { %743 = vbcast.lane.b32.xlu1 %v721_v59, 296  ;;  %755 = vbcast.lane.b32.xlu0 %v721_v59, 320 }
 0x2bc   : > { %751 = vbcast.lane.b32.xlu1 %v721_v59, 312  ;;  %763 = vbcast.lane.b32.xlu0 %v721_v59, 336 }
 0x2c0   : > { %759 = vbcast.lane.b32.xlu1 %v721_v59, 328  ;;  %771 = vbcast.lane.b32.xlu0 %v721_v59, 352 }
 0x2c4   : > { %767 = vbcast.lane.b32.xlu1 %v721_v59, 344  ;;  %779 = vbcast.lane.b32.xlu0 %v721_v59, 368 }
 0x2c8   : > { %775 = vbcast.lane.b32.xlu1 %v721_v59, 360  ;;  %790 = vbcast.lane.b32.xlu0 %v788_v12, 256 }
 0x2cc   : > { %783 = vbcast.lane.b32.xlu1 %v721_v59, 376  ;;  %798 = vbcast.lane.b32.xlu0 %v788_v12, 272 }
 0x2d0   : > { %794 = vbcast.lane.b32.xlu1 %v788_v12, 264  ;;  %806 = vbcast.lane.b32.xlu0 %v788_v12, 288 }
 0x2d4   : > { %802 = vbcast.lane.b32.xlu1 %v788_v12, 280  ;;  %814 = vbcast.lane.b32.xlu0 %v788_v12, 304 }
 0x2d8   : > { %810 = vbcast.lane.b32.xlu1 %v788_v12, 296  ;;  %822 = vbcast.lane.b32.xlu0 %v788_v12, 320 }
 0x2dc   : > { %818 = vbcast.lane.b32.xlu1 %v788_v12, 312  ;;  %830 = vbcast.lane.b32.xlu0 %v788_v12, 336 }
 0x2e0   : > { %826 = vbcast.lane.b32.xlu1 %v788_v12, 328  ;;  %838 = vbcast.lane.b32.xlu0 %v788_v12, 352 }
 0x2e4   : > { %834 = vbcast.lane.b32.xlu1 %v788_v12, 344  ;;  %846 = vbcast.lane.b32.xlu0 %v788_v12, 368 }
 0x2e8   : > { %842 = vbcast.lane.b32.xlu1 %v788_v12, 360 }
 0x2ec   : > { %850 = vbcast.lane.b32.xlu1 %v788_v12, 376  ;;  %v1526_v12 = vld [vmem:[#allocation9_spill] sm:$0xff] }
 0x31e   : > { %v728_v42 = vpop.permute.xlu1 %727  ;;  %v724_v24 = vpop.permute.xlu0 %723 }
 0x31f   : > { %v853_v43 = vmul.f32 %v728_v42, %v1081_v5  ;;  %v852_v49 = vmul.f32 %v724_v24, %v1071_v1  ;;  %v1527_v24 = vld [vmem:[#allocation12_spill] sm:$0xff] }
 0x321   : > { %885 = vst.msk [vmem:[%s1366_s25 + $0x8] sm:$0xff] %vm211_vm0, %v853_v43  ;;  %884 = vst.msk [vmem:[%s1366_s25] sm:$0xff] %vm211_vm0, %v852_v49 }
 0x322   : > { %v732_v60 = vpop.permute.xlu1 %731  ;;  %v740_v26 = vpop.permute.xlu0 %739 }
 0x323   : > { %v854_v32 = vmul.f32 %v732_v60, %v1091_v9  ;;  %v856_v0 = vmul.f32 %v740_v26, %v1111_v17  ;;  %v1528_v26 = vld [vmem:[#allocation11_spill] sm:$0xff] }
 0x325   : > { %886 = vst.msk [vmem:[%s1366_s25 + $0x10] sm:$0xff] %vm211_vm0, %v854_v32  ;;  %888 = vst.msk [vmem:[%s1366_s25 + $0x20] sm:$0xff] %vm211_vm0, %v856_v0  ;;  %v1529_v0 = vld [vmem:[#allocation15_spill] sm:$0xff] }
 0x326   : > { %v736_v52 = vpop.permute.xlu1 %735  ;;  %v748_v5 = vpop.permute.xlu0 %747 }
 0x327   : > { %v855_v1 = vmul.f32 %v736_v52, %v1101_v13  ;;  %v858_v27 = vmul.f32 %v748_v5, %v1131_v25 }
 0x329   : > { %887 = vst.msk [vmem:[%s1366_s25 + $0x18] sm:$0xff] %vm211_vm0, %v855_v1  ;;  %890 = vst.msk [vmem:[%s1366_s25 + $0x30] sm:$0xff] %vm211_vm0, %v858_v27  ;;  %v1530_v27 = vld [vmem:[#allocation13_spill] sm:$0xff] }
 0x32a   : > { %v744_v20 = vpop.permute.xlu1 %743  ;;  %v756_v9 = vpop.permute.xlu0 %755 }
 0x32b   : > { %v857_v17 = vmul.f32 %v744_v20, %v1121_v21  ;;  %v860_v30 = vmul.f32 %v756_v9, %v1151_v33  ;;  %v1531_v9 = vld [vmem:[#allocation19_spill] sm:$0xff] }
 0x32d   : > { %889 = vst.msk [vmem:[%s1366_s25 + $0x28] sm:$0xff] %vm211_vm0, %v857_v17  ;;  %892 = vst.msk [vmem:[%s1366_s25 + $0x40] sm:$0xff] %vm211_vm0, %v860_v30 }
 0x32e   : > { %v752_v36 = vpop.permute.xlu1 %751  ;;  %v764_v13 = vpop.permute.xlu0 %763 }
 0x32f   : > { %v859_v25 = vmul.f32 %v752_v36, %v1141_v29  ;;  %v862_v31 = vmul.f32 %v764_v13, %v1171_v41  ;;  %v1514_v41 = vld [vmem:[#allocation14_spill] sm:$0xff]  ;;  %v1532_v36 = vld [vmem:[#allocation17_spill] sm:$0xff] }
 0x331   : > { %891 = vst.msk [vmem:[%s1366_s25 + $0x38] sm:$0xff] %vm211_vm0, %v859_v25  ;;  %894 = vst.msk [vmem:[%s1366_s25 + $0x50] sm:$0xff] %vm211_vm0, %v862_v31  ;;  %v1533_v31 = vld [vmem:[#allocation21_spill] sm:$0xff] }
 0x332   : > { %v760_v3 = vpop.permute.xlu1 %759  ;;  %v772_v21 = vpop.permute.xlu0 %771 }
 0x333   : > { %v861_v33 = vmul.f32 %v760_v3, %v1161_v37  ;;  %v864_v34 = vmul.f32 %v772_v21, %v1513_v55 }
 0x335   : > { %893 = vst.msk [vmem:[%s1366_s25 + $0x48] sm:$0xff] %vm211_vm0, %v861_v33  ;;  %896 = vst.msk [vmem:[%s1366_s25 + $0x60] sm:$0xff] %vm211_vm0, %v864_v34 }
 0x336   : > { %v768_v45 = vpop.permute.xlu1 %767  ;;  %v780_v29 = vpop.permute.xlu0 %779 }
 0x337   : > { %v863_v61 = vmul.f32 %v768_v45, %v1514_v41  ;;  %v866_v53 = vmul.f32 %v780_v29, %v1515_v54 }
 0x339   : > { %895 = vst.msk [vmem:[%s1366_s25 + $0x58] sm:$0xff] %vm211_vm0, %v863_v61  ;;  %898 = vst.msk [vmem:[%s1366_s25 + $0x70] sm:$0xff] %vm211_vm0, %v866_v53 }
 0x33a   : > { %v776_v40 = vpop.permute.xlu1 %775  ;;  %v791_v37 = vpop.permute.xlu0 %790 }
 0x33b   : > { %v865_v58 = vmul.f32 %v776_v40, %v1516_v57  ;;  %v868_v35 = vmul.f32 %v791_v37, %v1517_v63 }
 0x33d   : > { %897 = vst.msk [vmem:[%s1366_s25 + $0x68] sm:$0xff] %vm211_vm0, %v865_v58  ;;  %900 = vst.msk [vmem:[%s1366_s25 + $0x80] sm:$0xff] %vm211_vm0, %v868_v35 }
 0x33e   : > { %v784_v38 = vpop.permute.xlu1 %783  ;;  %v799_v62 = vpop.permute.xlu0 %798 }
 0x33f   : > { %v867_v6 = vmul.f32 %v784_v38, %v1518_v10  ;;  %v870_v7 = vmul.f32 %v799_v62, %v1519_v11 }
 0x341   : > { %899 = vst.msk [vmem:[%s1366_s25 + $0x78] sm:$0xff] %vm211_vm0, %v867_v6  ;;  %902 = vst.msk [vmem:[%s1366_s25 + $0x90] sm:$0xff] %vm211_vm0, %v870_v7 }
 0x342   : > { %v795_v16 = vpop.permute.xlu1 %794  ;;  %v807_v46 = vpop.permute.xlu0 %806 }
 0x343   : > { %v869_v15 = vmul.f32 %v795_v16, %v1520_v14  ;;  %v872_v50 = vmul.f32 %v807_v46, %v1521_v4 }
 0x345   : > { %901 = vst.msk [vmem:[%s1366_s25 + $0x88] sm:$0xff] %vm211_vm0, %v869_v15  ;;  %904 = vst.msk [vmem:[%s1366_s25 + $0xa0] sm:$0xff] %vm211_vm0, %v872_v50 }
 0x346   : > { %v803_v48 = vpop.permute.xlu1 %802  ;;  %v815_v51 = vpop.permute.xlu0 %814 }
 0x347   : > { %v871_v19 = vmul.f32 %v803_v48, %v1522_v18  ;;  %v874_v56 = vmul.f32 %v815_v51, %v1523_v28 }
 0x349   : > { %903 = vst.msk [vmem:[%s1366_s25 + $0x98] sm:$0xff] %vm211_vm0, %v871_v19  ;;  %906 = vst.msk [vmem:[%s1366_s25 + $0xb0] sm:$0xff] %vm211_vm0, %v874_v56 }
 0x34a   : > { %v811_v2 = vpop.permute.xlu1 %810  ;;  %v823_v44 = vpop.permute.xlu0 %822 }
 0x34b   : > { %v873_v23 = vmul.f32 %v811_v2, %v1524_v22  ;;  %v876_v8 = vmul.f32 %v823_v44, %v1525_v47 }
 0x34d   : > { %905 = vst.msk [vmem:[%s1366_s25 + $0xa8] sm:$0xff] %vm211_vm0, %v873_v23  ;;  %908 = vst.msk [vmem:[%s1366_s25 + $0xc0] sm:$0xff] %vm211_vm0, %v876_v8 }
 0x34e   : > { %v819_v59 = vpop.permute.xlu1 %818  ;;  %v831_v39 = vpop.permute.xlu0 %830 }
 0x34f   : > { %v875_v42 = vmul.f32 %v819_v59, %v1526_v12  ;;  %v878_v43 = vmul.f32 %v831_v39, %v1527_v24 }
 0x351   : > { %907 = vst.msk [vmem:[%s1366_s25 + $0xb8] sm:$0xff] %vm211_vm0, %v875_v42  ;;  %910 = vst.msk [vmem:[%s1366_s25 + $0xd0] sm:$0xff] %vm211_vm0, %v878_v43 }
 0x352   : > { %v827_v49 = vpop.permute.xlu1 %826  ;;  %v839_v60 = vpop.permute.xlu0 %838 }
 0x353   : > { %v877_v32 = vmul.f32 %v827_v49, %v1528_v26  ;;  %v880_v52 = vmul.f32 %v839_v60, %v1529_v0 }
 0x355   : > { %909 = vst.msk [vmem:[%s1366_s25 + $0xc8] sm:$0xff] %vm211_vm0, %v877_v32  ;;  %912 = vst.msk [vmem:[%s1366_s25 + $0xe0] sm:$0xff] %vm211_vm0, %v880_v52 }
 0x356   : > { %v835_v5 = vpop.permute.xlu1 %834  ;;  %v847_v1 = vpop.permute.xlu0 %846 }
 0x357   : > { %v879_v20 = vmul.f32 %v835_v5, %v1530_v27  ;;  %v882_v17 = vmul.f32 %v847_v1, %v1531_v9 }
 0x359   : > { %911 = vst.msk [vmem:[%s1366_s25 + $0xd8] sm:$0xff] %vm211_vm0, %v879_v20  ;;  %914 = vst.msk [vmem:[%s1366_s25 + $0xf0] sm:$0xff] %vm211_vm0, %v882_v17 }
 0x35a   : > { %v843_v30 = vpop.permute.xlu1 %842 }
 0x35b   : > { %v881_v13 = vmul.f32 %v843_v30, %v1532_v36 }
 0x35d   : > { %913 = vst.msk [vmem:[%s1366_s25 + $0xe8] sm:$0xff] %vm211_vm0, %v881_v13 }
 0x35e   : > { %v851_v25 = vpop.permute.xlu1 %850 }
 0x35f   : > { %v883_v3 = vmul.f32 %v851_v25, %v1533_v31 }
 0x361   : > { %915 = vst.msk [vmem:[%s1366_s25 + $0xf8] sm:$0xff] %vm211_vm0, %v883_v3 }
 0x362 PF: > { %s13_s12 = sadd.s32 1, %s1025_s12  }
 0x363   : > { %p10_p4 = scmp.ge.s32.totalorder %s13_s12, 4  }
 0x365   :  { %12 = sbr.rel (!%p10_p4) target bundleno = 1 (0x1), region = 62 }

</bundles_post_ra>
